<compile_context>
chip_gen: v6e
topology: v6e:2x2x1
jax: 0.10.0
libtpu: 0.0.40
codegen_flags: <defaults>
</compile_context>

<pallas_src>
import jax
import jax.numpy as jnp
import numpy as np
from jax.experimental import pallas as pl
from jax.experimental.pallas import tpu as pltpu


def _round_up(x, m):
    return (x + m - 1) // m * m


# --------------------------- kernels ----------------------------------------

def gru_seq_kernel(gx_ref, h0_ref, wh_ref, bhn_ref, hout_ref, h_scr):
    """One grid step = Tu unrolled GRU timesteps; hidden carried in VMEM scratch."""
    t = pl.program_id(1)                       # sequential time-block index
    Hp = h_scr.shape[1]
    Tu = gx_ref.shape[0]

    @pl.when(t == 0)
    def _():                                   # new batch block -> reload its h0
        h_scr[...] = h0_ref[...]

    h = h_scr[...]                             # (Bb, Hp) f32 recurrence state
    wh = wh_ref[...]                           # (Hp, 3*Hp) compute dtype (bf16 default)
    bhn = bhn_ref[...]                         # (1, Hp) f32

    for u in range(Tu):                        # static unroll amortizes grid overhead
        gx = gx_ref[u].astype(jnp.float32)     # (Bb, 3*Hp): Wx[idx] + merged biases
        # hidden -> gates: single MXU matmul per step, f32 accumulation
        gh = jnp.dot(h.astype(wh.dtype), wh,
                     preferred_element_type=jnp.float32)        # (Bb, 3*Hp)
        # PyTorch GRUCell gate math (gate order r | z | n); 128-aligned slices.
        r = jax.nn.sigmoid(gx[:, 0:Hp] + gh[:, 0:Hp])
        z = jax.nn.sigmoid(gx[:, Hp:2 * Hp] + gh[:, Hp:2 * Hp])
        n = jnp.tanh(gx[:, 2 * Hp:3 * Hp] + r * (gh[:, 2 * Hp:3 * Hp] + bhn))
        h = (1.0 - z) * n + z * h
        hout_ref[u] = h                        # per-step hidden (projection hoisted out)

    h_scr[...] = h


def out_proj_kernel(h_ref, wo_ref, bo_ref, logits_ref):
    """Fully-parallel output projection over a tile of T*B hidden rows."""
    h = h_ref[...].astype(wo_ref.dtype)
    logits_ref[...] = (jnp.dot(h, wo_ref[...], preferred_element_type=jnp.float32)
                       + bo_ref[...])


# --------------------------- wrapper -----------------------------------------

def char_rnn_forward_seq(idxs_tb, h0, params, *,
                         compute_dtype=jnp.bfloat16, unroll=4, batch_blocks=1):
    """Run T GRU timesteps + output projection with Pallas kernels.

    idxs_tb: (T, B) int32 token indices (timestep-major, like lossFn's loop).
    h0:      (B, H) float32 initial hidden state.
    Returns (logits (T, B, V) f32, h_T (B, H) f32).
    """
    wx, wh, bx, bh, wo, bo = params
    V = wx.shape[0]
    H = h0.shape[1]
    T, B = idxs_tb.shape
    Hp = _round_up(H, 128)
    Vp = _round_up(V, 128)

    # timestep unroll (pad T to a multiple of Tu; padded steps are discarded)
    Tu = max(1, min(unroll, T))
    Tp = _round_up(T, Tu)

    # optional batch-parallel axis (useful on v7x's two TensorCores)
    if batch_blocks < 1 or B % batch_blocks != 0:
        batch_blocks = 1
    Bb = B // batch_blocks
    if batch_blocks > 1 and Bb % 8 != 0:       # keep sublane-aligned batch blocks
        batch_blocks, Bb = 1, B

    def pad_gate_cols(w, rows, rows_p):
        # (rows, 3*H) -> (rows_p, 3*Hp), padding each gate block separately.
        w3 = w.reshape(rows, 3, H)
        w3 = jnp.pad(w3, ((0, rows_p - rows), (0, 0), (0, Hp - H)))
        return w3.reshape(rows_p, 3 * Hp)

    wx_p = pad_gate_cols(wx, V, V)                               # (V, 3*Hp) f32
    wh_p = pad_gate_cols(wh, H, Hp).astype(compute_dtype)        # (Hp, 3*Hp)
    bx3 = pad_gate_cols(bx, 1, 1).reshape(1, 3, Hp)
    bh3 = pad_gate_cols(bh, 1, 1).reshape(1, 3, Hp)
    wo_p = jnp.pad(wo, ((0, Hp - H), (0, Vp - V))).astype(compute_dtype)  # (Hp, Vp)
    bo_p = jnp.pad(bo, ((0, 0), (0, Vp - V)))                    # (1, Vp) f32

    # Merged input-side bias: r,z gates take (bx+bh); n keeps only bx
    # (b_hn must stay inside the r*(...) term per the GRUCell formula).
    gx_bias = jnp.concatenate([bx3[:, 0] + bh3[:, 0],
                               bx3[:, 1] + bh3[:, 1],
                               bx3[:, 2]], axis=-1)              # (1, 3*Hp) f32
    bhn = bh3[:, 2]                                              # (1, Hp) f32

    # one-hot(idx) @ Wx is a row gather of Wx; precomputed for the whole
    # sequence (it does not depend on h), streamed per step in compute dtype.
    # TODO(synk): for very long sequences / small vocab, keep Wx resident in
    # VMEM and gather in-kernel via scalar prefetch instead of materializing gx.
    gx_all = (jnp.take(wx_p, idxs_tb, axis=0) + gx_bias).astype(compute_dtype)
    gx_all = jnp.pad(gx_all, ((0, Tp - T), (0, 0), (0, 0)))      # (Tp, B, 3*Hp)

    h0_p = jnp.pad(h0, ((0, 0), (0, Hp - H)))                    # (B, Hp) f32

    grid_spec = pltpu.PrefetchScalarGridSpec(
        num_scalar_prefetch=0,
        grid=(batch_blocks, Tp // Tu),
        in_specs=[
            pl.BlockSpec((Tu, Bb, 3 * Hp), lambda b, t: (t, b, 0)),  # gx stream
            pl.BlockSpec((Bb, Hp), lambda b, t: (b, 0)),             # h0 per batch block
            pl.BlockSpec((Hp, 3 * Hp), lambda b, t: (0, 0)),         # Wh (resident)
            pl.BlockSpec((1, Hp), lambda b, t: (0, 0)),              # b_hn (resident)
        ],
        out_specs=pl.BlockSpec((Tu, Bb, Hp), lambda b, t: (t, b, 0)),  # h_t per step
        scratch_shapes=[pltpu.VMEM((Bb, Hp), jnp.float32)],          # hidden carry
    )

    h_all_p = pl.pallas_call(
        gru_seq_kernel,
        out_shape=jax.ShapeDtypeStruct((Tp, B, Hp), jnp.float32),
        grid_spec=grid_spec,
        compiler_params=pltpu.CompilerParams(
            dimension_semantics=("parallel", "arbitrary"),  # batch ∥, time sequential
            vmem_limit_bytes=64 * 1024 * 1024),
    )(gx_all, h0_p, wh_p, bhn)

    h_all_p = h_all_p[:T]                                        # (T, B, Hp)
    h_T = h_all_p[T - 1, :, :H]                                  # final hidden

    # ---- output projection, hoisted out of the serial loop: one big batched
    # matmul over all T*B hidden rows (fully parallel second pallas_call) ----
    rows = T * B
    rows8 = _round_up(rows, 8)
    TM = min(256, rows8)
    rows_pad = _round_up(rows, TM)
    h_flat = jnp.pad(h_all_p.reshape(rows, Hp), ((0, rows_pad - rows), (0, 0)))

    logits_flat = pl.pallas_call(
        out_proj_kernel,
        out_shape=jax.ShapeDtypeStruct((rows_pad, Vp), jnp.float32),
        grid=(rows_pad // TM,),
        in_specs=[
            pl.BlockSpec((TM, Hp), lambda i: (i, 0)),
            pl.BlockSpec((Hp, Vp), lambda i: (0, 0)),
            pl.BlockSpec((1, Vp), lambda i: (0, 0)),
        ],
        out_specs=pl.BlockSpec((TM, Vp), lambda i: (i, 0)),
        compiler_params=pltpu.CompilerParams(
            dimension_semantics=("parallel",),
            vmem_limit_bytes=64 * 1024 * 1024),
    )(h_flat, wo_p, bo_p)

    logits = logits_flat[:rows, :V].reshape(T, B, V)
    return logits, h_T


def char_rnn_forward(idxs, h, params, *, compute_dtype=jnp.bfloat16):
    """Single timestep (matches CHAR_RNN.forward): logits (B, V) + new hidden."""
    logits_seq, h_new = char_rnn_forward_seq(
        idxs.reshape(1, -1).astype(jnp.int32), h, params,
        compute_dtype=compute_dtype, unroll=1, batch_blocks=1)
    return logits_seq[0], h_new


# ------------------------- pure-JAX reference -------------------------------

def reference_step(idx_b, h, params):
    wx, wh, bx, bh, wo, bo = params
    V = wx.shape[0]
    H = h.shape[1]
    x = jax.nn.one_hot(idx_b, V, dtype=jnp.float32)
    gx = x @ wx + bx
    gh = h @ wh + bh
    r = jax.nn.sigmoid(gx[:, 0:H] + gh[:, 0:H])
    z = jax.nn.sigmoid(gx[:, H:2 * H] + gh[:, H:2 * H])
    n = jnp.tanh(gx[:, 2 * H:3 * H] + r * gh[:, 2 * H:3 * H])
    h_new = (1.0 - z) * n + z * h
    logits = h_new @ wo + bo
    return logits, h_new


def reference_seq(idxs_tb, h0, params):
    logits = []
    h = h0
    for t in range(idxs_tb.shape[0]):
        lg, h = reference_step(idxs_tb[t], h, params)
        logits.append(lg)
    return jnp.stack(logits, axis=0), h


# TODO(synk): optimizer / CrossEntropyLoss / np.random-based sampling from the
# PyTorch module are training/host-side logic and are not part of the kernel.

if __name__ == "__main__":
    VOCAB, HIDDEN, BATCH, SEQ = 16, 32, 16, 8

    key = jax.random.PRNGKey(0)
    k_wx, k_wh, k_bx, k_bh, k_wo, k_bo, k_idx = jax.random.split(key, 7)

    scale = 0.1
    wx = scale * jax.random.normal(k_wx, (VOCAB, 3 * HIDDEN), jnp.float32)
    wh = scale * jax.random.normal(k_wh, (HIDDEN, 3 * HIDDEN), jnp.float32)
    bx = scale * jax.random.normal(k_bx, (1, 3 * HIDDEN), jnp.float32)
    bh = scale * jax.random.normal(k_bh, (1, 3 * HIDDEN), jnp.float32)
    wo = scale * jax.random.normal(k_wo, (HIDDEN, VOCAB), jnp.float32)
    bo = scale * jax.random.normal(k_bo, (1, VOCAB), jnp.float32)
    params = (wx, wh, bx, bh, wo, bo)

    idxs_tb = jax.random.randint(k_idx, (SEQ, BATCH), 0, VOCAB, jnp.int32)
    h0 = jnp.zeros((BATCH, HIDDEN), jnp.float32)          # init_hidden()

    ref_logits_seq, ref_h_T = reference_seq(idxs_tb, h0, params)

    # fused T-step forward, f32 compute path (exact check vs reference)
    logits_f32, hT_f32 = char_rnn_forward_seq(
        idxs_tb, h0, params, compute_dtype=jnp.float32, unroll=4, batch_blocks=2)
    jax.block_until_ready((logits_f32, hT_f32))
    np.testing.assert_allclose(np.asarray(logits_f32), np.asarray(ref_logits_seq),
                               rtol=1e-5, atol=1e-5)
    np.testing.assert_allclose(np.asarray(hT_f32), np.asarray(ref_h_T),
                               rtol=1e-5, atol=1e-5)

    # default bf16 compute path (the performance configuration)
    logits_bf, hT_bf = char_rnn_forward_seq(
        idxs_tb, h0, params, unroll=4, batch_blocks=2)
    jax.block_until_ready((logits_bf, hT_bf))
    np.testing.assert_allclose(np.asarray(logits_bf), np.asarray(ref_logits_seq),
                               rtol=3e-2, atol=3e-2)
    np.testing.assert_allclose(np.asarray(hT_bf), np.asarray(ref_h_T),
                               rtol=3e-2, atol=3e-2)

    # single-step forward (= CHAR_RNN.forward for one character)
    logits1, h1 = char_rnn_forward(idxs_tb[0], h0, params,
                                   compute_dtype=jnp.float32)
    jax.block_until_ready((logits1, h1))
    ref_logits1, ref_h1 = reference_step(idxs_tb[0], h0, params)
    np.testing.assert_allclose(np.asarray(logits1), np.asarray(ref_logits1),
                               rtol=1e-5, atol=1e-5)
    np.testing.assert_allclose(np.asarray(h1), np.asarray(ref_h1),
                               rtol=1e-5, atol=1e-5)

    print("KERNEL_OK")
</pallas_src>

<mosaic_0001>
module attributes {stable_mosaic.version = 11 : i64} {
  func.func @gru_seq_kernel(%arg0: i32, %arg1: i32, %arg2: memref<4x8x384xf32, #tpu.memory_space<vmem>>, %arg3: memref<8x128xf32, #tpu.memory_space<vmem>>, %arg4: memref<128x384xf32, #tpu.memory_space<vmem>>, %arg5: memref<1x128xf32, #tpu.memory_space<vmem>>, %arg6: memref<4x8x128xf32, #tpu.memory_space<vmem>>, %arg7: memref<8x128xf32, #tpu.memory_space<vmem>>) attributes {dimension_semantics = [#tpu.dimension_semantics<parallel>, #tpu.dimension_semantics<arbitrary>], iteration_bounds = array<i64: 2, 2>, scalar_prefetch = 0 : i64, scratch_operands = 1 : i64, tpu.core_type = #tpu.core_type<tc>, window_params = [{transform_indices = @transform_0, window_bounds = array<i64: 4, 8, 384>}, {transform_indices = @transform_1, window_bounds = array<i64: 8, 128>}, {pipeline_mode = #tpu.pipeline_mode<synchronous>, transform_indices = @transform_2, window_bounds = array<i64: 128, 384>}, {pipeline_mode = #tpu.pipeline_mode<synchronous>, transform_indices = @transform_3, window_bounds = array<i64: 1, 128>}, {transform_indices = @transform_4, window_bounds = array<i64: 4, 8, 128>}]} {
    %c0_i32 = arith.constant 0 : i32
    %0 = arith.cmpi eq, %arg1, %c0_i32 : i32
    %1 = arith.extui %0 : i1 to i32
    %c0_i32_0 = arith.constant 0 : i32
    %2 = arith.cmpi ne, %1, %c0_i32_0 : i32
    scf.if %2 {
      %c0_44 = arith.constant 0 : index
      %c0_45 = arith.constant 0 : index
      %143 = vector.load %arg3[%c0_44, %c0_45] : memref<8x128xf32, #tpu.memory_space<vmem>>, vector<8x128xf32>
      %c0_46 = arith.constant 0 : index
      %c0_47 = arith.constant 0 : index
      %144 = vector.load %arg7[%c0_46, %c0_47] : memref<8x128xf32, #tpu.memory_space<vmem>>, vector<8x128xf32>
      tpu.vector_store %arg7[%c0_46, %c0_47], %143 {strides = array<i32>} : memref<8x128xf32, #tpu.memory_space<vmem>>, vector<8x128xf32>,
    } else {
    }
    %c0 = arith.constant 0 : index
    %c0_1 = arith.constant 0 : index
    %3 = vector.load %arg7[%c0, %c0_1] : memref<8x128xf32, #tpu.memory_space<vmem>>, vector<8x128xf32>
    %c0_2 = arith.constant 0 : index
    %c0_3 = arith.constant 0 : index
    %4 = vector.load %arg4[%c0_2, %c0_3] : memref<128x384xf32, #tpu.memory_space<vmem>>, vector<128x384xf32>
    %c0_4 = arith.constant 0 : index
    %c0_5 = arith.constant 0 : index
    %5 = vector.load %arg5[%c0_4, %c0_5] : memref<1x128xf32, #tpu.memory_space<vmem>>, vector<1x128xf32>
    %c0_6 = arith.constant 0 : index
    %c0_7 = arith.constant 0 : index
    %c0_8 = arith.constant 0 : index
    %6 = vector.load %arg2[%c0_6, %c0_7, %c0_8] : memref<4x8x384xf32, #tpu.memory_space<vmem>>, vector<1x8x384xf32>
    %7 = vector.shape_cast %6 : vector<1x8x384xf32> to vector<8x384xf32>
    %cst = arith.constant dense<0.000000e+00> : vector<8x384xf32>
    %8 = tpu.matmul %3, %4, %cst {dimension_numbers = #tpu.dot_dimension_numbers<[1], [0], [0], [1], [0, 0, 1, 1], [], []>} : vector<8x128xf32>, vector<128x384xf32>, vector<8x384xf32> -> vector<8x384xf32>
    %9 = vector.extract_strided_slice %7 {offsets = [0, 0], sizes = [8, 128], strides = [1, 1]} : vector<8x384xf32> to vector<8x128xf32>
    %10 = vector.extract_strided_slice %8 {offsets = [0, 0], sizes = [8, 128], strides = [1, 1]} : vector<8x384xf32> to vector<8x128xf32>
    %11 = arith.addf %9, %10 : vector<8x128xf32>
    %12 = arith.negf %11 : vector<8x128xf32>
    %13 = math.exp %12 : vector<8x128xf32>
    %cst_9 = arith.constant 1.000000e+00 : f32
    %14 = vector.broadcast %cst_9 : f32 to vector<8x128xf32>
    %15 = arith.addf %14, %13 : vector<8x128xf32>
    %16 = arith.divf %14, %15 : vector<8x128xf32>
    %17 = vector.extract_strided_slice %7 {offsets = [0, 128], sizes = [8, 128], strides = [1, 1]} : vector<8x384xf32> to vector<8x128xf32>
    %18 = vector.extract_strided_slice %8 {offsets = [0, 128], sizes = [8, 128], strides = [1, 1]} : vector<8x384xf32> to vector<8x128xf32>
    %19 = arith.addf %17, %18 : vector<8x128xf32>
    %20 = arith.negf %19 : vector<8x128xf32>
    %21 = math.exp %20 : vector<8x128xf32>
    %cst_10 = arith.constant 1.000000e+00 : f32
    %22 = vector.broadcast %cst_10 : f32 to vector<8x128xf32>
    %23 = arith.addf %22, %21 : vector<8x128xf32>
    %24 = arith.divf %22, %23 : vector<8x128xf32>
    %25 = vector.extract_strided_slice %7 {offsets = [0, 256], sizes = [8, 128], strides = [1, 1]} : vector<8x384xf32> to vector<8x128xf32>
    %26 = vector.extract_strided_slice %8 {offsets = [0, 256], sizes = [8, 128], strides = [1, 1]} : vector<8x384xf32> to vector<8x128xf32>
    %27 = vector.broadcast %5 : vector<1x128xf32> to vector<8x128xf32>
    %28 = arith.addf %26, %27 : vector<8x128xf32>
    %29 = arith.mulf %16, %28 : vector<8x128xf32>
    %30 = arith.addf %25, %29 : vector<8x128xf32>
    %31 = math.tanh %30 : vector<8x128xf32>
    %cst_11 = arith.constant 1.000000e+00 : f32
    %32 = vector.broadcast %cst_11 : f32 to vector<8x128xf32>
    %33 = arith.subf %32, %24 : vector<8x128xf32>
    %34 = arith.mulf %33, %31 : vector<8x128xf32>
    %35 = arith.mulf %24, %3 : vector<8x128xf32>
    %36 = arith.addf %34, %35 : vector<8x128xf32>
    %c0_12 = arith.constant 0 : index
    %c0_13 = arith.constant 0 : index
    %c0_14 = arith.constant 0 : index
    %37 = vector.load %arg6[%c0_12, %c0_13, %c0_14] : memref<4x8x128xf32, #tpu.memory_space<vmem>>, vector<1x8x128xf32>
    %38 = vector.shape_cast %37 : vector<1x8x128xf32> to vector<8x128xf32>
    %39 = vector.shape_cast %36 : vector<8x128xf32> to vector<1x8x128xf32>
    tpu.vector_store %arg6[%c0_12, %c0_13, %c0_14], %39 {strides = array<i32>} : memref<4x8x128xf32, #tpu.memory_space<vmem>>, vector<1x8x128xf32>,
    %c1 = arith.constant 1 : index
    %c0_15 = arith.constant 0 : index
    %c0_16 = arith.constant 0 : index
    %40 = vector.load %arg2[%c1, %c0_15, %c0_16] : memref<4x8x384xf32, #tpu.memory_space<vmem>>, vector<1x8x384xf32>
    %41 = vector.shape_cast %40 : vector<1x8x384xf32> to vector<8x384xf32>
    %cst_17 = arith.constant dense<0.000000e+00> : vector<8x384xf32>
    %42 = tpu.matmul %36, %4, %cst_17 {dimension_numbers = #tpu.dot_dimension_numbers<[1], [0], [0], [1], [0, 0, 1, 1], [], []>} : vector<8x128xf32>, vector<128x384xf32>, vector<8x384xf32> -> vector<8x384xf32>
    %43 = vector.extract_strided_slice %41 {offsets = [0, 0], sizes = [8, 128], strides = [1, 1]} : vector<8x384xf32> to vector<8x128xf32>
    %44 = vector.extract_strided_slice %42 {offsets = [0, 0], sizes = [8, 128], strides = [1, 1]} : vector<8x384xf32> to vector<8x128xf32>
    %45 = arith.addf %43, %44 : vector<8x128xf32>
    %46 = arith.negf %45 : vector<8x128xf32>
    %47 = math.exp %46 : vector<8x128xf32>
    %cst_18 = arith.constant 1.000000e+00 : f32
    %48 = vector.broadcast %cst_18 : f32 to vector<8x128xf32>
    %49 = arith.addf %48, %47 : vector<8x128xf32>
    %50 = arith.divf %48, %49 : vector<8x128xf32>
    %51 = vector.extract_strided_slice %41 {offsets = [0, 128], sizes = [8, 128], strides = [1, 1]} : vector<8x384xf32> to vector<8x128xf32>
    %52 = vector.extract_strided_slice %42 {offsets = [0, 128], sizes = [8, 128], strides = [1, 1]} : vector<8x384xf32> to vector<8x128xf32>
    %53 = arith.addf %51, %52 : vector<8x128xf32>
    %54 = arith.negf %53 : vector<8x128xf32>
    %55 = math.exp %54 : vector<8x128xf32>
    %cst_19 = arith.constant 1.000000e+00 : f32
    %56 = vector.broadcast %cst_19 : f32 to vector<8x128xf32>
    %57 = arith.addf %56, %55 : vector<8x128xf32>
    %58 = arith.divf %56, %57 : vector<8x128xf32>
    %59 = vector.extract_strided_slice %41 {offsets = [0, 256], sizes = [8, 128], strides = [1, 1]} : vector<8x384xf32> to vector<8x128xf32>
    %60 = vector.extract_strided_slice %42 {offsets = [0, 256], sizes = [8, 128], strides = [1, 1]} : vector<8x384xf32> to vector<8x128xf32>
    %61 = vector.broadcast %5 : vector<1x128xf32> to vector<8x128xf32>
    %62 = arith.addf %60, %61 : vector<8x128xf32>
    %63 = arith.mulf %50, %62 : vector<8x128xf32>
    %64 = arith.addf %59, %63 : vector<8x128xf32>
    %65 = math.tanh %64 : vector<8x128xf32>
    %cst_20 = arith.constant 1.000000e+00 : f32
    %66 = vector.broadcast %cst_20 : f32 to vector<8x128xf32>
    %67 = arith.subf %66, %58 : vector<8x128xf32>
    %68 = arith.mulf %67, %65 : vector<8x128xf32>
    %69 = arith.mulf %58, %36 : vector<8x128xf32>
    %70 = arith.addf %68, %69 : vector<8x128xf32>
    %c1_21 = arith.constant 1 : index
    %c0_22 = arith.constant 0 : index
    %c0_23 = arith.constant 0 : index
    %71 = vector.load %arg6[%c1_21, %c0_22, %c0_23] : memref<4x8x128xf32, #tpu.memory_space<vmem>>, vector<1x8x128xf32>
    %72 = vector.shape_cast %71 : vector<1x8x128xf32> to vector<8x128xf32>
    %73 = vector.shape_cast %70 : vector<8x128xf32> to vector<1x8x128xf32>
    tpu.vector_store %arg6[%c1_21, %c0_22, %c0_23], %73 {strides = array<i32>} : memref<4x8x128xf32, #tpu.memory_space<vmem>>, vector<1x8x128xf32>,
    %c2 = arith.constant 2 : index
    %c0_24 = arith.constant 0 : index
    %c0_25 = arith.constant 0 : index
    %74 = vector.load %arg2[%c2, %c0_24, %c0_25] : memref<4x8x384xf32, #tpu.memory_space<vmem>>, vector<1x8x384xf32>
    %75 = vector.shape_cast %74 : vector<1x8x384xf32> to vector<8x384xf32>
    %cst_26 = arith.constant dense<0.000000e+00> : vector<8x384xf32>
    %76 = tpu.matmul %70, %4, %cst_26 {dimension_numbers = #tpu.dot_dimension_numbers<[1], [0], [0], [1], [0, 0, 1, 1], [], []>} : vector<8x128xf32>, vector<128x384xf32>, vector<8x384xf32> -> vector<8x384xf32>
    %77 = vector.extract_strided_slice %75 {offsets = [0, 0], sizes = [8, 128], strides = [1, 1]} : vector<8x384xf32> to vector<8x128xf32>
    %78 = vector.extract_strided_slice %76 {offsets = [0, 0], sizes = [8, 128], strides = [1, 1]} : vector<8x384xf32> to vector<8x128xf32>
    %79 = arith.addf %77, %78 : vector<8x128xf32>
    %80 = arith.negf %79 : vector<8x128xf32>
    %81 = math.exp %80 : vector<8x128xf32>
    %cst_27 = arith.constant 1.000000e+00 : f32
    %82 = vector.broadcast %cst_27 : f32 to vector<8x128xf32>
    %83 = arith.addf %82, %81 : vector<8x128xf32>
    %84 = arith.divf %82, %83 : vector<8x128xf32>
    %85 = vector.extract_strided_slice %75 {offsets = [0, 128], sizes = [8, 128], strides = [1, 1]} : vector<8x384xf32> to vector<8x128xf32>
    %86 = vector.extract_strided_slice %76 {offsets = [0, 128], sizes = [8, 128], strides = [1, 1]} : vector<8x384xf32> to vector<8x128xf32>
    %87 = arith.addf %85, %86 : vector<8x128xf32>
    %88 = arith.negf %87 : vector<8x128xf32>
    %89 = math.exp %88 : vector<8x128xf32>
    %cst_28 = arith.constant 1.000000e+00 : f32
    %90 = vector.broadcast %cst_28 : f32 to vector<8x128xf32>
    %91 = arith.addf %90, %89 : vector<8x128xf32>
    %92 = arith.divf %90, %91 : vector<8x128xf32>
    %93 = vector.extract_strided_slice %75 {offsets = [0, 256], sizes = [8, 128], strides = [1, 1]} : vector<8x384xf32> to vector<8x128xf32>
    %94 = vector.extract_strided_slice %76 {offsets = [0, 256], sizes = [8, 128], strides = [1, 1]} : vector<8x384xf32> to vector<8x128xf32>
    %95 = vector.broadcast %5 : vector<1x128xf32> to vector<8x128xf32>
    %96 = arith.addf %94, %95 : vector<8x128xf32>
    %97 = arith.mulf %84, %96 : vector<8x128xf32>
    %98 = arith.addf %93, %97 : vector<8x128xf32>
    %99 = math.tanh %98 : vector<8x128xf32>
    %cst_29 = arith.constant 1.000000e+00 : f32
    %100 = vector.broadcast %cst_29 : f32 to vector<8x128xf32>
    %101 = arith.subf %100, %92 : vector<8x128xf32>
    %102 = arith.mulf %101, %99 : vector<8x128xf32>
    %103 = arith.mulf %92, %70 : vector<8x128xf32>
    %104 = arith.addf %102, %103 : vector<8x128xf32>
    %c2_30 = arith.constant 2 : index
    %c0_31 = arith.constant 0 : index
    %c0_32 = arith.constant 0 : index
    %105 = vector.load %arg6[%c2_30, %c0_31, %c0_32] : memref<4x8x128xf32, #tpu.memory_space<vmem>>, vector<1x8x128xf32>
    %106 = vector.shape_cast %105 : vector<1x8x128xf32> to vector<8x128xf32>
    %107 = vector.shape_cast %104 : vector<8x128xf32> to vector<1x8x128xf32>
    tpu.vector_store %arg6[%c2_30, %c0_31, %c0_32], %107 {strides = array<i32>} : memref<4x8x128xf32, #tpu.memory_space<vmem>>, vector<1x8x128xf32>,
    %c3 = arith.constant 3 : index
    %c0_33 = arith.constant 0 : index
    %c0_34 = arith.constant 0 : index
    %108 = vector.load %arg2[%c3, %c0_33, %c0_34] : memref<4x8x384xf32, #tpu.memory_space<vmem>>, vector<1x8x384xf32>
    %109 = vector.shape_cast %108 : vector<1x8x384xf32> to vector<8x384xf32>
    %cst_35 = arith.constant dense<0.000000e+00> : vector<8x384xf32>
    %110 = tpu.matmul %104, %4, %cst_35 {dimension_numbers = #tpu.dot_dimension_numbers<[1], [0], [0], [1], [0, 0, 1, 1], [], []>} : vector<8x128xf32>, vector<128x384xf32>, vector<8x384xf32> -> vector<8x384xf32>
    %111 = vector.extract_strided_slice %109 {offsets = [0, 0], sizes = [8, 128], strides = [1, 1]} : vector<8x384xf32> to vector<8x128xf32>
    %112 = vector.extract_strided_slice %110 {offsets = [0, 0], sizes = [8, 128], strides = [1, 1]} : vector<8x384xf32> to vector<8x128xf32>
    %113 = arith.addf %111, %112 : vector<8x128xf32>
    %114 = arith.negf %113 : vector<8x128xf32>
    %115 = math.exp %114 : vector<8x128xf32>
    %cst_36 = arith.constant 1.000000e+00 : f32
    %116 = vector.broadcast %cst_36 : f32 to vector<8x128xf32>
    %117 = arith.addf %116, %115 : vector<8x128xf32>
    %118 = arith.divf %116, %117 : vector<8x128xf32>
    %119 = vector.extract_strided_slice %109 {offsets = [0, 128], sizes = [8, 128], strides = [1, 1]} : vector<8x384xf32> to vector<8x128xf32>
    %120 = vector.extract_strided_slice %110 {offsets = [0, 128], sizes = [8, 128], strides = [1, 1]} : vector<8x384xf32> to vector<8x128xf32>
    %121 = arith.addf %119, %120 : vector<8x128xf32>
    %122 = arith.negf %121 : vector<8x128xf32>
    %123 = math.exp %122 : vector<8x128xf32>
    %cst_37 = arith.constant 1.000000e+00 : f32
    %124 = vector.broadcast %cst_37 : f32 to vector<8x128xf32>
    %125 = arith.addf %124, %123 : vector<8x128xf32>
    %126 = arith.divf %124, %125 : vector<8x128xf32>
    %127 = vector.extract_strided_slice %109 {offsets = [0, 256], sizes = [8, 128], strides = [1, 1]} : vector<8x384xf32> to vector<8x128xf32>
    %128 = vector.extract_strided_slice %110 {offsets = [0, 256], sizes = [8, 128], strides = [1, 1]} : vector<8x384xf32> to vector<8x128xf32>
    %129 = vector.broadcast %5 : vector<1x128xf32> to vector<8x128xf32>
    %130 = arith.addf %128, %129 : vector<8x128xf32>
    %131 = arith.mulf %118, %130 : vector<8x128xf32>
    %132 = arith.addf %127, %131 : vector<8x128xf32>
    %133 = math.tanh %132 : vector<8x128xf32>
    %cst_38 = arith.constant 1.000000e+00 : f32
    %134 = vector.broadcast %cst_38 : f32 to vector<8x128xf32>
    %135 = arith.subf %134, %126 : vector<8x128xf32>
    %136 = arith.mulf %135, %133 : vector<8x128xf32>
    %137 = arith.mulf %126, %104 : vector<8x128xf32>
    %138 = arith.addf %136, %137 : vector<8x128xf32>
    %c3_39 = arith.constant 3 : index
    %c0_40 = arith.constant 0 : index
    %c0_41 = arith.constant 0 : index
    %139 = vector.load %arg6[%c3_39, %c0_40, %c0_41] : memref<4x8x128xf32, #tpu.memory_space<vmem>>, vector<1x8x128xf32>
    %140 = vector.shape_cast %139 : vector<1x8x128xf32> to vector<8x128xf32>
    %141 = vector.shape_cast %138 : vector<8x128xf32> to vector<1x8x128xf32>
    tpu.vector_store %arg6[%c3_39, %c0_40, %c0_41], %141 {strides = array<i32>} : memref<4x8x128xf32, #tpu.memory_space<vmem>>, vector<1x8x128xf32>,
    %c0_42 = arith.constant 0 : index
    %c0_43 = arith.constant 0 : index
    %142 = vector.load %arg7[%c0_42, %c0_43] : memref<8x128xf32, #tpu.memory_space<vmem>>, vector<8x128xf32>
    tpu.vector_store %arg7[%c0_42, %c0_43], %138 {strides = array<i32>} : memref<8x128xf32, #tpu.memory_space<vmem>>, vector<8x128xf32>,
    return
  }
  func.func @transform_0(%arg0: i32, %arg1: i32) -> (i32, i32, i32) {
    %c0_i32 = arith.constant 0 : i32
    %c0_i32_0 = arith.constant 0 : i32
    return %arg1, %arg0, %c0_i32 : i32, i32, i32
  }
  func.func @transform_1(%arg0: i32, %arg1: i32) -> (i32, i32) {
    %c0_i32 = arith.constant 0 : i32
    %c0_i32_0 = arith.constant 0 : i32
    return %arg0, %c0_i32 : i32, i32
  }
  func.func @transform_2(%arg0: i32, %arg1: i32) -> (i32, i32) {
    %c0_i32 = arith.constant 0 : i32
    %c0_i32_0 = arith.constant 0 : i32
    %c0_i32_1 = arith.constant 0 : i32
    return %c0_i32, %c0_i32_0 : i32, i32
  }
  func.func @transform_3(%arg0: i32, %arg1: i32) -> (i32, i32) {
    %c0_i32 = arith.constant 0 : i32
    %c0_i32_0 = arith.constant 0 : i32
    %c0_i32_1 = arith.constant 0 : i32
    return %c0_i32, %c0_i32_0 : i32, i32
  }
  func.func @transform_4(%arg0: i32, %arg1: i32) -> (i32, i32, i32) {
    %c0_i32 = arith.constant 0 : i32
    %c0_i32_0 = arith.constant 0 : i32
    return %arg1, %arg0, %c0_i32 : i32, i32, i32
  }
}

</mosaic_0001>

<bundles_post_ra>
// kernel: tpu_custom_call.1
= control target key start
LH: loop header
LB: loop body
LE: loop exit
PB: predicated region body
PF: predicated region fallthrough
CT: control target
= control target key end

     0   :  { %s2505_s0 = inlined_call_operand.hbm [shape: f32[8,16,384], index: 0, kind: input, shape index: {}]   ;;  %s2506_s1 = inlined_call_operand.hbm [shape: f32[16,128], index: 1, kind: input, shape index: {}]   ;;  %s2507_s2 = inlined_call_operand.hbm [shape: f32[128,384], index: 2, kind: input, shape index: {}]   ;;  %s2508_s3 = inlined_call_operand.vmem [shape: f32[1,128], index: 3, kind: input, shape index: {}]   ;;  %s2509_s4 = inlined_call_operand.hbm [shape: f32[8,16,128], index: 4, kind: output, shape index: {}]  }
   0x1   :  { %2527 = sst [smem:[#allocation25_spill]] %s2507_s2 }
   0x2   :  { %2528 = sst [smem:[#allocation26_spill]] %s2508_s3 }
   0x3   :  { %2529 = sst [smem:[#allocation27_spill]] %s2509_s4 }
   0x4   :  { %9 = vsyncpa [#allocation4], 0 }
   0x5   :  { %11 = vsyncpa [#allocation4 + $0x1], 0 }
   0x6   :  { %12 = vsyncpa [#allocation7], 0 }
   0x7   :  { %14 = vsyncpa [#allocation7 + $0x1], 0 }
   0x8   :  { %15 = vsyncpa [#allocation5], 0 }
   0x9   :  { %17 = vsyncpa [#allocation5 + $0x1], 0  ;;  %s1832_s15 = smov 0   ;;  %s1834_s16 = smov 0  }
   0xa   :  { %s1836_s17 = smov 0   ;;  %s1838_s18 = smov 0  }
   0xb   :  { %s1840_s19 = smov 0   ;;  %s1842_s20 = smov 0  }
   0xc   :  { %s1844_s21 = smov 0   ;;  %s1846_s22 = smov 0  }
   0xd   :  { %s1848_s23 = smov 0   ;;  %s1850_s24 = smov 0  }
   0xe   :  { %s1852_s25 = smov 0  }
   0xf LB: > { %2530 = sst [smem:[#allocation14_spill]] %s1765_s18  ;;  %s1888_s26 = sadd.s32 4294967295, %s1793_s25   ;;  %s1793_s25 = sphi %s1852_s25, %s23_s25   ;;  %s1789_s24 = sphi %s1850_s24, %s2578_s24   ;;  %s1785_s23 = sphi %s1848_s23, %s2569_s23   ;;  %s1781_s22 = sphi %s1846_s22, %s2577_s22   ;;  %s1777_s21 = sphi %s1844_s21, %s2568_s21   ;;  %s1773_s20 = sphi %s1842_s20, %s2576_s20   ;;  %s1769_s19 = sphi %s1840_s19, %s2575_s19   ;;  %s1765_s18 = sphi %s1838_s18, %s2574_s18   ;;  %s1761_s17 = sphi %s1836_s17, %s2573_s17   ;;  %s1757_s16 = sphi %s1834_s16, %s2572_s16   ;;  %s1753_s15 = sphi %s1832_s15, %s2571_s15  }
  0x10   : > { %2531 = sst [smem:[#allocation15_spill]] %s1777_s21  ;;  %s1163_s27 = sadd.s32 4294967294, %s1793_s25  }
  0x11   : > { %2532 = sst [smem:[#allocation16_spill]] %s1781_s22  ;;  %p57_p0 = scmp.ne.s32.totalorder %s1769_s19, %s1765_s18 }
  0x12   : > { %2533 = sst [smem:[#allocation17_spill]] %s1785_s23  ;;  %p2521_p1 = scmp.eq.s32.totalorder %s1888_s26, 0 }
  0x13   : > { %p157_p3 = scmp.eq.s32.totalorder %s1163_s27, 3  ;;  %p1164_p5 = scmp.ge.s32.totalorder %s1793_s25, 1 }
  0x14   : > { %p1897_p4 = por %p2521_p1, %p57_p0  ;;  %p164_p7 = scmp.lt.s32.totalorder %s1793_s25, 5 }
  0x15   : > { %p1902_p6 = por %p157_p3, %p57_p0  ;;  %s1795_s5 = smov [#allocation8]  }
  0x16   : > { %p1907_p8 = pnand %p1164_p5, %p164_p7  ;;  %s176_s6 = sshll.u32 %s1795_s5, 4  ;;  %s177_s6 = int_to_ptr.vmem [resolvable:$true] %s176_s6 }
  0x17   : > { %s2535_s29 = scalar_select %p1902_p6, 1, 0 }
  0x18   : > { %p1427_p9 = pneg %p1907_p8  ;;  %s1594_s7 = scalar_lea.vmem %s177_s6, 6144 }
  0x19   : > { %2536 = sst [smem:[#allocation18_spill]] %s2535_s29  ;;  %p1595_p12 = scmp.ne.s32.totalorder %s177_s6, %s1594_s7 }
  0x1a   : > { %p1428_p10 = pnand %p1427_p9, %p2521_p1  ;;  %p1602_p3 = scmp.lt.s32.totalorder %s177_s6, %s177_s6 }
  0x1b   : > { %p1603_p2 = scmp.lt.s32.totalorder %s1594_s7, %s1594_s7 }
  0x1c   : > { %p1585_p11 = pneg %p1428_p10 }
  0x1d   : > { %p1604_p6 = por %p1603_p2, %p1602_p3 }
  0x1e   : > { %p1597_p13 = pnand %p1595_p12, %p1585_p11 }
  0x20   : > { %p1598_p0 = pneg %p1597_p13 }
  0x22   : > { %p1605_p5 = pnand %p1604_p6, %p1598_p0 }
  0x24   : > { %1608 = shalt.err (!%p1605_p5)
}
  0x25   : > { %s2510_s8 = smov 384   ;;  %s2511_s9 = smov 24  }
  0x26   : > { %s2538_s2 = sld [smem:[#allocation25_spill]]  ;;  %s32_s12 = sadd.s32 1, %s1785_s23 }
  0x27   : > { %p33_p2 = scmp.ge.s32.totalorder %s32_s12, 2  ;;  %s35_s13 = sadd.s32 1, %s1789_s24 }
  0x28   : > { %s44_s14 = sadd.s32 1, %s1773_s20  ;;  %p51_p6 = scmp.ne.s32.totalorder %s1773_s20, %s1769_s19 }
  0x29   : > { %s2580_s12 = smov (%p33_p2, %s32_s12), 0  ;;  %s2582_s13 = smov (!%p33_p2, %s35_s13), %s1789_s24 }
  0x2a   : > { %2539 = sst [smem:[#allocation19_spill]] %s2580_s12  ;;  %s39_s27 = ssub.s32 %s1785_s23, %s2580_s12 }
  0x2b   : > { %p52_p7 = scmp.eq.s32.totalorder %s1793_s25, 0  ;;  %p37_p9 = scmp.ge.s32.totalorder %s2582_s13, 2 }
  0x2c   : > { %1430 = dma.hbm_to_vmem [thread:$0]  (!%p1428_p10), %s2538_s2, 6144, %s177_s6, [#allocation7], %s2510_s8, %s2510_s8, %s2511_s9  }
  0x2d   : > { %p2540_p11 = scmp.eq.s32.totalorder %s1888_s26, 3  ;;  %p53_p10 = por %p52_p7, %p51_p6 }
  0x2e   : > { %p2520_p13 = scmp.lt.s32.totalorder %s1793_s25, 4  ;;  %s2584_s13 = smov (%p37_p9, %s2582_s13), 0 }
  0x2f   : > { %p1934_p12 = por %p2540_p11, %p51_p6  ;;  %2543 = sst [smem:[#allocation21_spill]] %s2584_s13 }
  0x30   : > { %s193_s6 = sand.u32 1, %s1773_s20   ;;  %s1414_s7 = smul.u32 3, %s1789_s24 }
  0x31   : > { %s2541_s5 = scalar_select %p1934_p12, 1, 0 }
  0x32   : > { %s1947_s10 = ssub.s32 %s1789_s24, %s2584_s13  ;;  %s1413_s8 = smul.u32 96, %s193_s6 }
  0x33   : > { %2542 = sst [smem:[#allocation20_spill]] %s2541_s5  ;;  %s41_s11 = sor.u32 %s1947_s10, %s39_s27 }
  0x34   : > { %p42_p0 = scmp.eq.s32.totalorder %s41_s11, 0  ;;  %s1415_s9 = smul.u32 24, %s1785_s23 }
  0x35   : > { %p1953_p3 = pnand %p2520_p13, %p53_p10  ;;  %s197_s18 = scalar_lea.vmem [#allocation3], %s1413_s8 }
  0x36   : > { %s1958_s12 = scalar_select %p42_p0, %s1773_s20, %s44_s14  }
  0x37   : > { %s204_s29 = sadd.s32 %s1415_s9, %s1414_s7  ;;  %s207_s4 = sshll.u32 %s197_s18, 4  ;;  %s208_s4 = int_to_ptr.vmem [resolvable:$true] %s207_s4 }
  0x38   : > { %s1169_s5 = sshll.u32 %s204_s29, 7  ;;  %s194_s3 = scalar_lea.sflag [#allocation4], %s193_s6 }
  0x39   : > { %s206_s27 = scalar_lea.hbm %s2505_s0, %s1169_s5  ;;  %p1611_p5 = pneg %p1953_p3 }
  0x3a   : > { %s1622_s11 = scalar_lea.vmem %s208_s4, 1536  ;;  %s1798_s23 = smov [#allocation3]  }
  0x3b   : > { %p1623_p2 = scmp.ne.s32.totalorder %s208_s4, %s1622_s11  ;;  %s1627_s21 = sshll.u32 %s1798_s23, 4  ;;  %s1628_s21 = int_to_ptr.vmem [resolvable:$false] %s1627_s21 }
  0x3c   : > { %s1629_s14 = scalar_lea.vmem %s1628_s21, 3072  ;;  %p1630_p11 = scmp.lt.s32.totalorder %s208_s4, %s1628_s21 }
  0x3d   : > { %p1625_p6 = pnand %p1623_p2, %p1611_p5  ;;  %p1631_p10 = scmp.lt.s32.totalorder %s1629_s14, %s1622_s11 }
  0x3f   : > { %p1626_p9 = pneg %p1625_p6  ;;  %p1632_p0 = por %p1631_p10, %p1630_p11 }
  0x41   : > { %p1633_p13 = pnand %p1632_p0, %p1626_p9 }
  0x43   : > { %1636 = shalt.err (!%p1633_p13)
}
  0x44   : > { %s1799_s18 = smov 768   ;;  %s2545_s22 = smov 24  }
  0x45   : > { %s2546_s29 = smov 384   ;;  %p68_p13 = scmp.eq.s32.totalorder %s1947_s10, 0 }
  0x46   : > { %1434 = dma.hbm_to_vmem [thread:$0]  (!%p1953_p3), %s206_s27, 1536, %s208_s4, %s194_s3, %s1799_s18, %s2546_s29, %s2545_s22  }
  0x47   : > { %s70_s21 = sadd.s32 1, %s1761_s17  ;;  %p77_p5 = scmp.ne.s32.totalorder %s1761_s17, %s1757_s16 }
  0x48   : > { %s1974_s2 = scalar_select %p68_p13, %s1761_s17, %s70_s21  }
  0x49   : > { %p79_p2 = por %p77_p5, %p52_p7  ;;  %p83_p6 = scmp.ne.s32.totalorder %s1757_s16, %s1753_s15 }
  0x4a   : > { %s217_s23 = sand.u32 1, %s1793_s25   ;;  %s219_s8 = sand.u32 1, %s1761_s17  }
  0x4b   : > { %p1984_p9 = por %p83_p6, %p2521_p1  ;;  %s1170_s13 = sshll.u32 %s219_s8, 3 }
  0x4c   : > { %s1171_s5 = sshll.u32 %s1789_s24, 7  ;;  %s221_s4 = scalar_lea.vmem [#allocation6], %s1170_s13 }
  0x4d   : > { %s226_s3 = scalar_lea.hbm %s2506_s1, %s1171_s5  ;;  %s228_s10 = sshll.u32 %s221_s4, 4  ;;  %s229_s10 = int_to_ptr.vmem [resolvable:$true] %s228_s10 }
  0x4e   : > { %p2548_p3 = scmp.lt.s32.totalorder %s1793_s25, 4  ;;  %s218_s15 = scalar_lea.sflag [#allocation7], %s217_s23 }
  0x4f   : > { %s1650_s11 = scalar_lea.vmem %s229_s10, 128  ;;  %s1800_s14 = smov [#allocation6]  }
  0x50   : > { %p1994_p11 = pnand %p2548_p3, %p79_p2  ;;  %p1651_p10 = scmp.ne.s32.totalorder %s229_s10, %s1650_s11 }
  0x51   : > { %s1655_s18 = sshll.u32 %s1800_s14, 4  ;;  %s1656_s18 = int_to_ptr.vmem [resolvable:$false] %s1655_s18 }
  0x52   : > { %p1639_p7 = pneg %p1994_p11  ;;  %s1657_s22 = scalar_lea.vmem %s1656_s18, 256 }
  0x53   : > { %p1658_p5 = scmp.lt.s32.totalorder %s229_s10, %s1656_s18  ;;  %p1659_p6 = scmp.lt.s32.totalorder %s1657_s22, %s1650_s11 }
  0x54   : > { %p1653_p0 = pnand %p1651_p10, %p1639_p7 }
  0x55   : > { %p1660_p1 = por %p1659_p6, %p1658_p5 }
  0x56   : > { %p1654_p13 = pneg %p1653_p0 }
  0x58   : > { %p1661_p2 = pnand %p1660_p1, %p1654_p13 }
  0x5a   : > { %1664 = shalt.err (!%p1661_p2)
}
  0x5b   : > { %1437 = dma.hbm_to_vmem [thread:$0]  (!%p1994_p11), %s226_s3, 128, %s229_s10, %s218_s15  }
  0x5c   : > { %237 = sbr.rel (%p1907_p8) target bundleno = 1168 (0x490), region = 36 }
  0x61   : > { %s2005_s29 = sand.u32 1, %s1769_s19  }
  0x62   : > { %s1416_s21 = smul.u32 96, %s2005_s29  ;;  %s240_s23 = scalar_lea.sflag [#allocation4], %s2005_s29 }
  0x64   : > { %s2009_s8 = scalar_lea.vmem [#allocation3], %s1416_s21 }
  0x65   : > { %1736 = dma.done.wait (%p1897_p4), %s240_s23, 1536  }
  0x66   : > { %1738 = vsyncadd (%p1897_p4), %s240_s23, 4294965760  ;;  %s248_s30 = sand.u32 1, %s1888_s26   ;;  %s250_s13 = sand.u32 1, %s1757_s16  }
  0x67   : > { %s1173_s5 = sshll.u32 %s250_s13, 3  ;;  %s249_s6 = scalar_lea.sflag [#allocation7], %s248_s30 }
  0x68   : > { %s252_s7 = scalar_lea.vmem [#allocation6], %s1173_s5 }
  0x69   : > { %1740 = dma.done.wait (%p1984_p9), %s249_s6, 128  }
  0x6a   : > { %1742 = vsyncadd (%p1984_p9), %s249_s6, 4294967168  ;;  %p2550_p1 = scmp.eq.s32.totalorder %s1888_s26, 0 }
  0x6c   : > { %1744 = dma.done.wait (%p2550_p1), [#allocation7], 6144   ;;  %p2551_p8 = pmov %p2550_p1 }
  0x6d   : > { %s1175_s28 = sshll.u32 %s2005_s29, 5  ;;  %s2552_s4 = sld [smem:[#allocation15_spill]] }
  0x6e   : > { %1746 = vsyncadd (%p2551_p8), [#allocation7], 4294961152  ;;  %s2026_s3 = scalar_lea.vmem [#allocation9], %s1175_s28 }
  0x73   : > { %p1176_p4 = scmp.ne.s32.totalorder %s2552_s4, 0 }
  0x75   : > { %291 = sbr.rel (%p1176_p4) target bundleno = 124 (0x7c), region = 52 }
  0x7a   : > { %v292_v0 = vld [vmem:[%s252_s7] sm:$0xff] }
  0x7b   : > { %293 = vst [vmem:[#allocation2] sm:$0xff] %v292_v0 }
  0x7c PF: > { %v2029_v1 = vld [vmem:[#allocation8 + $0x170] sm:$0xff]  ;;  %v2031_v2 = vld [vmem:[#allocation8 + $0x168] sm:$0xff]  ;;  %v2033_v3 = vld [vmem:[#allocation8 + $0x158] sm:$0xff]  ;;  %v2522_v5 = vmov 0.0   ;;  %vm1802_vm0 = vmmov 0   ;;  %s2556_s10 = sld [smem:[#allocation26_spill]] }
  0x7d   : > { %347 = vmatprep.subr.mxu0 %v2029_v1  ;;  %v2036_v4 = vld [vmem:[#allocation8 + $0x150] sm:$0xff]  ;;  %1273 = vmatprep.subr.mxu1 %v2522_v5  ;;  %v2040_v6 = vld [vmem:[#allocation8 + $0x140] sm:$0xff]  ;;  %v2044_v7 = vld [vmem:[#allocation8 + $0x138] sm:$0xff]  ;;  %s2561_s27 = sld [smem:[#allocation15_spill]]  ;;  %s1041_s21 = sshll.u32 %s2026_s3, 4  ;;  %s2442_s21 = int_to_ptr.vmem [resolvable:$true] %s1041_s21 }
  0x7e   : > { %348 = vmatpush1.msra.mxu0 %v2031_v2  ;;  %411 = vmatprep.mubr.f32.mxu0 %v2522_v5  ;;  %v2049_v8 = vld [vmem:[#allocation8 + $0x128] sm:$0xff]  ;;  %v2052_v9 = vld [vmem:[#allocation8 + $0x120] sm:$0xff]  ;;  %v2055_v10 = vld [vmem:[#allocation8 + $0x110] sm:$0xff]  ;;  %s2562_s15 = sld [smem:[#allocation16_spill]]  ;;  %s1026_s5 = scalar_lea.sflag [#allocation5], %s2005_s29 }
  0x7f   : > { %349 = vmatprep.subr.mxu0 %v2033_v3  ;;  %1305 = vmatprep.mubr.msk.f32.mxu1 %vm1802_vm0, %v2522_v5  ;;  %v2058_v11 = vld [vmem:[#allocation8 + $0x108] sm:$0xff]  ;;  %v2061_v12 = vld [vmem:[#allocation8 + $0xf8] sm:$0xff]  ;;  %v2064_v13 = vld [vmem:[#allocation8 + $0xf0] sm:$0xff]  ;;  %s2564_s13 = sld [smem:[#allocation27_spill]]  ;;  %s1665_s6 = scalar_lea.vmem %s2442_s21, 512 }
  0x80   : > { %350 = vmatpush1.msra.mxu0 %v2036_v4  ;;  %v2067_v14 = vld [vmem:[#allocation8 + $0xe0] sm:$0xff]  ;;  %v2069_v15 = vld [vmem:[#allocation8 + $0x178] sm:$0xff]  ;;  %v2078_v18 = vld [vmem:[#allocation8 + $0xc8] sm:$0xff]  ;;  %p1666_p9 = scmp.ne.s32.totalorder %s2442_s21, %s1665_s6  ;;  %s1803_s7 = smov [#allocation9]  }
  0x81   : > { %351 = vmatprep.subr.mxu0 %v2040_v6  ;;  %v2072_v16 = vld [vmem:[#allocation8 + $0xd8] sm:$0xff]  ;;  %1274 = vmatpush3.msra.mxu1 %v2069_v15  ;;  %v2075_v17 = vld [vmem:[#allocation8 + $0x160] sm:$0xff]  ;;  %v2081_v19 = vld [vmem:[#allocation8 + $0x148] sm:$0xff]  ;;  %s1669_s28 = sshll.u32 %s1803_s7, 4  ;;  %s1670_s28 = int_to_ptr.vmem [resolvable:$false] %s1669_s28 }
  0x82   : > { %352 = vmatpush1.msra.mxu0 %v2044_v7  ;;  %1275 = vmatprep.subr.mxu1 %v2522_v5  ;;  %v2084_v20 = vld [vmem:[#allocation8 + $0xc0] sm:$0xff]  ;;  %v2088_v21 = vld [vmem:[#allocation8 + $0xb0] sm:$0xff]  ;;  %v2094_v23 = vld [vmem:[#allocation8 + $0xa8] sm:$0xff]  ;;  %p1667_p3 = pnand %p1666_p9, %p1934_p12  ;;  %s1671_s4 = scalar_lea.vmem %s1670_s28, 1024 }
  0x83   : > { %353 = vmatprep.subr.mxu0 %v2049_v8  ;;  %1276 = vmatpush3.msra.mxu1 %v2075_v17  ;;  %v2091_v22 = vld [vmem:[#allocation8 + $0x130] sm:$0xff]  ;;  %v2098_v24 = vld [vmem:[#allocation8 + $0x98] sm:$0xff]  ;;  %v2108_v27 = vld [vmem:[#allocation8 + $0x80] sm:$0xff]  ;;  %s1204_s11 = sshll.u32 %s2561_s27, 3  ;;  %p1672_p7 = scmp.lt.s32.totalorder %s2442_s21, %s1670_s28 }
  0x84   : > { %354 = vmatpush1.msra.mxu0 %v2052_v9  ;;  %1277 = vmatprep.subr.mxu1 %v2522_v5  ;;  %v2101_v25 = vld [vmem:[#allocation8 + $0x118] sm:$0xff]  ;;  %v2104_v26 = vld [vmem:[#allocation8 + $0x90] sm:$0xff]  ;;  %v2111_v28 = vld [vmem:[#allocation8 + $0x100] sm:$0xff]  ;;  %s1038_s14 = sadd.s32 %s2562_s15, %s1204_s11  ;;  %p1668_p11 = pneg %p1667_p3 }
  0x85   : > { %355 = vmatprep.subr.mxu0 %v2055_v10  ;;  %1278 = vmatpush3.msra.mxu1 %v2081_v19  ;;  %v2114_v29 = vld [vmem:[#allocation8 + $0x78] sm:$0xff]  ;;  %v2118_v30 = vld [vmem:[#allocation8 + $0x68] sm:$0xff]  ;;  %v2124_v32 = vld [vmem:[#allocation8 + $0x60] sm:$0xff]  ;;  %s1201_s22 = sshll.u32 %s1038_s14, 7  ;;  %p1673_p10 = scmp.lt.s32.totalorder %s1671_s4, %s1665_s6 }
  0x86   : > { %356 = vmatpush1.msra.mxu0 %v2058_v11  ;;  %1279 = vmatprep.subr.mxu1 %v2522_v5  ;;  %v2121_v31 = vld [vmem:[#allocation8 + $0xe8] sm:$0xff]  ;;  %v2128_v33 = vld [vmem:[#allocation8 + $0x50] sm:$0xff]  ;;  %v2138_v36 = vld [vmem:[#allocation8 + $0x38] sm:$0xff] }
  0x87   : > { %357 = vmatprep.subr.mxu0 %v2061_v12  ;;  %1280 = vmatpush3.msra.mxu1 %v2091_v22  ;;  %v2131_v34 = vld [vmem:[#allocation8 + $0xd0] sm:$0xff]  ;;  %v2134_v35 = vld [vmem:[#allocation8 + $0x48] sm:$0xff]  ;;  %v2141_v37 = vld [vmem:[#allocation8 + $0xb8] sm:$0xff]  ;;  %p1674_p0 = por %p1673_p10, %p1672_p7 }
  0x88   : > { %358 = vmatpush1.msra.mxu0 %v2064_v13  ;;  %1281 = vmatprep.subr.mxu1 %v2522_v5  ;;  %v2144_v38 = vld [vmem:[#allocation8 + $0x30] sm:$0xff]  ;;  %v2148_v39 = vld [vmem:[#allocation8 + $0x20] sm:$0xff]  ;;  %v2154_v41 = vld [vmem:[#allocation8 + $0x18] sm:$0xff] }
  0x89   : > { %359 = vmatprep.subr.mxu0 %v2067_v14  ;;  %1282 = vmatpush3.msra.mxu1 %v2101_v25  ;;  %v2151_v40 = vld [vmem:[#allocation8 + $0xa0] sm:$0xff]  ;;  %v2158_v42 = vld [vmem:[#allocation8 + $0x8] sm:$0xff]  ;;  %v2171_v46 = vld [vmem:[#allocation8 + $0x70] sm:$0xff]  ;;  %p1675_p13 = pnand %p1674_p0, %p1668_p11 }
  0x8a   : > { %360 = vmatpush1.msra.mxu0 %v2072_v16  ;;  %1283 = vmatprep.subr.mxu1 %v2522_v5  ;;  %2553 = vst [vmem:[#allocation22_spill] sm:$0xff] %v2158_v42  ;;  %v2161_v43 = vld [vmem:[#allocation8 + $0x88] sm:$0xff]  ;;  %v2164_v44 = vld [vmem:[#allocation8] sm:$0xff]  ;;  %v2177_v47 = vld [vmem:[#allocation8 + $0x58] sm:$0xff] }
  0x8b   : > { %361 = vmatprep.subr.mxu0 %v2078_v18  ;;  %1284 = vmatpush3.msra.mxu1 %v2111_v28  ;;  %2554 = vst [vmem:[#allocation23_spill] sm:$0xff] %v2164_v44  ;;  %v2168_v45 = vld [vmem:[#allocation2] sm:$0xff]  ;;  %v2182_v48 = vld [vmem:[#allocation8 + $0x40] sm:$0xff]  ;;  %v2194_v50 = vld [vmem:[#allocation8 + $0x10] sm:$0xff] }
  0x8c   : > { %362 = vmatpush1.msra.mxu0 %v2084_v20  ;;  %1285 = vmatprep.subr.mxu1 %v2522_v5  ;;  %v2188_v49 = vld [vmem:[#allocation8 + $0x28] sm:$0xff]  ;;  %2555 = vst [vmem:[#allocation24_spill] sm:$0xff] %v2194_v50  ;;  %v344_v51 = vld [vmem:[%s2009_s8] sm:$0xff]  ;;  %v345_v55 = vld [vmem:[%s2009_s8 + $0x8] sm:$0xff] }
  0x8d   : > { %363 = vmatprep.subr.mxu0 %v2088_v21  ;;  %1286 = vmatpush3.msra.mxu1 %v2121_v31  ;;  %v2270_v0 = vld [vmem:[%s2556_s10] ss:$0 sm:$0xff] }
  0x8e   : > { %364 = vmatpush1.msra.mxu0 %v2094_v23  ;;  %1287 = vmatprep.subr.mxu1 %v2522_v5 }
  0x8f   : > { %365 = vmatprep.subr.mxu0 %v2098_v24  ;;  %1288 = vmatpush3.msra.mxu1 %v2131_v34 }
  0x90   : > { %366 = vmatpush1.msra.mxu0 %v2104_v26  ;;  %1289 = vmatprep.subr.mxu1 %v2522_v5 }
  0x91   : > { %367 = vmatprep.subr.mxu0 %v2108_v27  ;;  %1290 = vmatpush3.msra.mxu1 %v2141_v37 }
  0x92   : > { %368 = vmatpush1.msra.mxu0 %v2114_v29  ;;  %1291 = vmatprep.subr.mxu1 %v2522_v5 }
  0x93   : > { %369 = vmatprep.subr.mxu0 %v2118_v30  ;;  %1292 = vmatpush3.msra.mxu1 %v2151_v40 }
  0x94   : > { %370 = vmatpush1.msra.mxu0 %v2124_v32  ;;  %1293 = vmatprep.subr.mxu1 %v2522_v5 }
  0x95   : > { %371 = vmatprep.subr.mxu0 %v2128_v33  ;;  %1294 = vmatpush3.msra.mxu1 %v2161_v43 }
  0x96   : > { %372 = vmatpush1.msra.mxu0 %v2134_v35  ;;  %1295 = vmatprep.subr.mxu1 %v2522_v5 }
  0x97   : > { %373 = vmatprep.subr.mxu0 %v2138_v36  ;;  %1296 = vmatpush3.msra.mxu1 %v2171_v46 }
  0x98   : > { %374 = vmatpush1.msra.mxu0 %v2144_v38  ;;  %1297 = vmatprep.subr.mxu1 %v2522_v5 }
  0x99   : > { %375 = vmatprep.subr.mxu0 %v2148_v39  ;;  %1298 = vmatpush3.msra.mxu1 %v2177_v47 }
  0x9a   : > { %376 = vmatpush1.msra.mxu0 %v2154_v41  ;;  %1299 = vmatprep.subr.mxu1 %v2522_v5 }
  0x9b   : > { %377 = vmatprep.subr.mxu0 %v2158_v42  ;;  %1300 = vmatpush3.msra.mxu1 %v2182_v48 }
  0x9c   : > { %378 = vmatpush1.msra.mxu0 %v2164_v44  ;;  %1301 = vmatprep.subr.mxu1 %v2522_v5 }
  0x9d   : > { %412 = vmatmul.mubr.f32.vlgmr.msra.gmra.mxu0 %v2168_v45  ;;  %521 = vmatprep.subr.mxu0 %v2029_v1 }
  0x9e   : > { %522 = vmatpush1.msra.mxu0 %v2031_v2  ;;  %1302 = vmatpush3.msra.mxu1 %v2188_v49 }
  0x9f   : > { %523 = vmatprep.subr.mxu0 %v2033_v3  ;;  %1303 = vmatprep.subr.mxu1 %v2522_v5 }
  0xa0   : > { %524 = vmatpush1.msra.mxu0 %v2036_v4  ;;  %1304 = vmatpush3.msra.mxu1 %v2194_v50 }
  0xa1   : > { %525 = vmatprep.subr.mxu0 %v2040_v6  ;;  %1306 = vmatmul.mubr.f32.vlgmr.msra.gmra.mxu1 %v2168_v45 }
  0xa2   : > { %526 = vmatpush1.msra.mxu0 %v2044_v7  ;;  %1308 = vmatprep.subr.mxu1 %v2522_v5 }
  0xa3   : > { %527 = vmatprep.subr.mxu0 %v2049_v8  ;;  %1309 = vmatpush3.msra.mxu1 %v2069_v15 }
  0xa4   : > { %528 = vmatpush1.msra.mxu0 %v2052_v9  ;;  %1310 = vmatprep.subr.mxu1 %v2522_v5 }
  0xa5   : > { %529 = vmatprep.subr.mxu0 %v2055_v10  ;;  %1311 = vmatpush3.msra.mxu1 %v2075_v17 }
  0xa6   : > { %530 = vmatpush1.msra.mxu0 %v2058_v11  ;;  %1312 = vmatprep.subr.mxu1 %v2522_v5 }
  0xa7   : > { %531 = vmatprep.subr.mxu0 %v2061_v12  ;;  %1313 = vmatpush3.msra.mxu1 %v2081_v19 }
  0xa8   : > { %532 = vmatpush1.msra.mxu0 %v2064_v13  ;;  %1314 = vmatprep.subr.mxu1 %v2522_v5 }
  0xa9   : > { %533 = vmatprep.subr.mxu0 %v2067_v14  ;;  %1315 = vmatpush3.msra.mxu1 %v2091_v22 }
  0xaa   : > { %534 = vmatpush1.msra.mxu0 %v2072_v16  ;;  %1316 = vmatprep.subr.mxu1 %v2522_v5 }
  0xab   : > { %535 = vmatprep.subr.mxu0 %v2078_v18  ;;  %1317 = vmatpush3.msra.mxu1 %v2101_v25 }
  0xac   : > { %536 = vmatpush1.msra.mxu0 %v2084_v20  ;;  %1318 = vmatprep.subr.mxu1 %v2522_v5 }
  0xad   : > { %537 = vmatprep.subr.mxu0 %v2088_v21  ;;  %1319 = vmatpush3.msra.mxu1 %v2111_v28 }
  0xae   : > { %538 = vmatpush1.msra.mxu0 %v2094_v23  ;;  %1320 = vmatprep.subr.mxu1 %v2522_v5 }
  0xaf   : > { %539 = vmatprep.subr.mxu0 %v2098_v24  ;;  %1321 = vmatpush3.msra.mxu1 %v2121_v31 }
  0xb0   : > { %540 = vmatpush1.msra.mxu0 %v2104_v26  ;;  %1322 = vmatprep.subr.mxu1 %v2522_v5 }
  0xb1   : > { %541 = vmatprep.subr.mxu0 %v2108_v27  ;;  %1323 = vmatpush3.msra.mxu1 %v2131_v34 }
  0xb2   : > { %542 = vmatpush1.msra.mxu0 %v2114_v29  ;;  %1324 = vmatprep.subr.mxu1 %v2522_v5 }
  0xb3   : > { %543 = vmatprep.subr.mxu0 %v2118_v30  ;;  %1325 = vmatpush3.msra.mxu1 %v2141_v37 }
  0xb4   : > { %544 = vmatpush1.msra.mxu0 %v2124_v32  ;;  %1326 = vmatprep.subr.mxu1 %v2522_v5 }
  0xb5   : > { %545 = vmatprep.subr.mxu0 %v2128_v33  ;;  %1327 = vmatpush3.msra.mxu1 %v2151_v40 }
  0xb6   : > { %546 = vmatpush1.msra.mxu0 %v2134_v35  ;;  %1328 = vmatprep.subr.mxu1 %v2522_v5 }
  0xb7   : > { %547 = vmatprep.subr.mxu0 %v2138_v36  ;;  %1329 = vmatpush3.msra.mxu1 %v2161_v43 }
  0xb8   : > { %548 = vmatpush1.msra.mxu0 %v2144_v38  ;;  %1330 = vmatprep.subr.mxu1 %v2522_v5 }
  0xb9   : > { %549 = vmatprep.subr.mxu0 %v2148_v39  ;;  %1331 = vmatpush3.msra.mxu1 %v2171_v46 }
  0xba   : > { %550 = vmatpush1.msra.mxu0 %v2154_v41  ;;  %1332 = vmatprep.subr.mxu1 %v2522_v5 }
  0xbb   : > { %551 = vmatprep.subr.mxu0 %v2158_v42  ;;  %1333 = vmatpush3.msra.mxu1 %v2177_v47 }
  0xbc   : > { %552 = vmatpush1.msra.mxu0 %v2164_v44  ;;  %585 = vmatprep.mubr.f32.mxu0 %v2522_v5 }
  0xbd   : > { %1334 = vmatprep.subr.mxu1 %v2522_v5  ;;  %1340 = vmatprep.mubr.msk.f32.mxu1 %vm1802_vm0, %v2522_v5 }
  0xbe   : > { %1335 = vmatpush3.msra.mxu1 %v2182_v48  ;;  %690 = vmatprep.subr.mxu0 %v2029_v1 }
  0xbf   : > { %1336 = vmatprep.subr.mxu1 %v2522_v5 }
  0xc0   : > { %1337 = vmatpush3.msra.mxu1 %v2188_v49 }
  0xc1   : > { %1338 = vmatprep.subr.mxu1 %v2522_v5 }
  0xc2   : > { %1339 = vmatpush3.msra.mxu1 %v2194_v50 }
  0xc3   : > { %1343 = vmatprep.subr.mxu1 %v2522_v5 }
 0x15d   : > { %v413_v52 = vpop.f32.mrf.mxu0 }
 0x15e   : > { %v488_v53 = vadd.f32 %v413_v52, %v344_v51 }
 0x15f   : > { %v415_v56 = vpop.f32.mrf.mxu0 }
 0x160   : > { %v1177_v54 = vmul.f32 -1.442695, %v488_v53  ;;  %v495_v57 = vadd.f32 %v415_v56, %v345_v55 }
 0x161   : > { %v484_v58 = vpop.f32.mrf.mxu1 }
 0x162   : > { %1543 = vpow2.f32 %v1177_v54  ;;  %v1178_v59 = vmul.f32 -1.442695, %v495_v57  ;;  %v508_v52 = vadd.f32 %v2270_v0, %v484_v58  ;;  %v346_v54 = vld [vmem:[%s2009_s8 + $0x10] sm:$0xff]  ;;  %v2557_v58 = vmov 0.0  }
 0x163   : > { %v1307_v60 = vpop.f32.mrf.mxu1 }
 0x164   : > { %1545 = vpow2.f32 %v1178_v59 }
 0x16f   : > { %v1544_v61 = vpop.eup %1543 }
 0x170   : > { %v492_v62 = vadd.f32 1.0, %v1544_v61 }
 0x171   : > { %v1546_v63 = vpop.eup %1545 }
 0x172   : > { %1547 = vrcp.f32 %v492_v62  ;;  %v499_v51 = vadd.f32 1.0, %v1546_v63 }
 0x174   : > { %1549 = vrcp.f32 %v499_v51 }
 0x17f   : > { %v1548_v53 = vpop.eup %1547 }
 0x180   : > { %v509_v55 = vmul.f32 %v1548_v53, %v508_v52 }
 0x181   : > { %v1550_v57 = vpop.eup %1549 }
 0x182   : > { %v510_v56 = vadd.f32 %v509_v55, %v346_v54  ;;  %v512_v59 = vsub.f32 1.0, %v1550_v57  ;;  %v514_v62 = vmul.f32 %v1550_v57, %v2168_v45  ;;  %v1180_v45 = vld [vmem:[%s2009_s8 + $0x18] sm:$0xff]  ;;  %v1181_v55 = vld [vmem:[%s2009_s8 + $0x20] sm:$0xff] }
 0x184   : > { %1551 = vtanh.f32 %v510_v56 }
 0x191   : > { %v1552_v60 = vpop.eup %1551 }
 0x192   : > { %v513_v61 = vmul.f32 %v1552_v60, %v512_v59 }
 0x194   : > { %v2275_v5 = vadd.f32 %v514_v62, %v513_v61 }
 0x196   : > { %516 = vst [vmem:[%s2026_s3] sm:$0xff] %v2275_v5  ;;  %586 = vmatmul.mubr.f32.vlgmr.msra.gmra.mxu0 %v2275_v5  ;;  %1341 = vmatmul.mubr.f32.vlgmr.msra.gmra.mxu1 %v2275_v5 }
 0x197   : > { %691 = vmatpush1.msra.mxu0 %v2031_v2  ;;  %1344 = vmatpush3.msra.mxu1 %v2069_v15 }
 0x198   : > { %692 = vmatprep.subr.mxu0 %v2033_v3  ;;  %1345 = vmatprep.subr.mxu1 %v2557_v58 }
 0x199   : > { %693 = vmatpush1.msra.mxu0 %v2036_v4  ;;  %1346 = vmatpush3.msra.mxu1 %v2075_v17 }
 0x19a   : > { %694 = vmatprep.subr.mxu0 %v2040_v6  ;;  %1347 = vmatprep.subr.mxu1 %v2557_v58 }
 0x19b   : > { %695 = vmatpush1.msra.mxu0 %v2044_v7  ;;  %1348 = vmatpush3.msra.mxu1 %v2081_v19 }
 0x19c   : > { %696 = vmatprep.subr.mxu0 %v2049_v8  ;;  %1349 = vmatprep.subr.mxu1 %v2557_v58 }
 0x19d   : > { %697 = vmatpush1.msra.mxu0 %v2052_v9  ;;  %1350 = vmatpush3.msra.mxu1 %v2091_v22 }
 0x19e   : > { %698 = vmatprep.subr.mxu0 %v2055_v10  ;;  %1351 = vmatprep.subr.mxu1 %v2557_v58 }
 0x19f   : > { %699 = vmatpush1.msra.mxu0 %v2058_v11  ;;  %1352 = vmatpush3.msra.mxu1 %v2101_v25 }
 0x1a0   : > { %700 = vmatprep.subr.mxu0 %v2061_v12  ;;  %1353 = vmatprep.subr.mxu1 %v2557_v58 }
 0x1a1   : > { %701 = vmatpush1.msra.mxu0 %v2064_v13  ;;  %1354 = vmatpush3.msra.mxu1 %v2111_v28 }
 0x1a2   : > { %702 = vmatprep.subr.mxu0 %v2067_v14  ;;  %1355 = vmatprep.subr.mxu1 %v2557_v58 }
 0x1a3   : > { %703 = vmatpush1.msra.mxu0 %v2072_v16  ;;  %1356 = vmatpush3.msra.mxu1 %v2121_v31 }
 0x1a4   : > { %704 = vmatprep.subr.mxu0 %v2078_v18  ;;  %1357 = vmatprep.subr.mxu1 %v2557_v58 }
 0x1a5   : > { %705 = vmatpush1.msra.mxu0 %v2084_v20  ;;  %1358 = vmatpush3.msra.mxu1 %v2131_v34 }
 0x1a6   : > { %706 = vmatprep.subr.mxu0 %v2088_v21  ;;  %1359 = vmatprep.subr.mxu1 %v2557_v58 }
 0x1a7   : > { %707 = vmatpush1.msra.mxu0 %v2094_v23  ;;  %1360 = vmatpush3.msra.mxu1 %v2141_v37 }
 0x1a8   : > { %708 = vmatprep.subr.mxu0 %v2098_v24  ;;  %1361 = vmatprep.subr.mxu1 %v2557_v58 }
 0x1a9   : > { %709 = vmatpush1.msra.mxu0 %v2104_v26  ;;  %1362 = vmatpush3.msra.mxu1 %v2151_v40 }
 0x1aa   : > { %710 = vmatprep.subr.mxu0 %v2108_v27  ;;  %1363 = vmatprep.subr.mxu1 %v2557_v58 }
 0x1ab   : > { %711 = vmatpush1.msra.mxu0 %v2114_v29  ;;  %1364 = vmatpush3.msra.mxu1 %v2161_v43 }
 0x1ac   : > { %712 = vmatprep.subr.mxu0 %v2118_v30  ;;  %1365 = vmatprep.subr.mxu1 %v2557_v58 }
 0x1ad   : > { %713 = vmatpush1.msra.mxu0 %v2124_v32  ;;  %1366 = vmatpush3.msra.mxu1 %v2171_v46 }
 0x1ae   : > { %714 = vmatprep.subr.mxu0 %v2128_v33  ;;  %1367 = vmatprep.subr.mxu1 %v2557_v58 }
 0x1af   : > { %715 = vmatpush1.msra.mxu0 %v2134_v35  ;;  %1368 = vmatpush3.msra.mxu1 %v2177_v47 }
 0x1b0   : > { %716 = vmatprep.subr.mxu0 %v2138_v36  ;;  %1369 = vmatprep.subr.mxu1 %v2557_v58 }
 0x1b1   : > { %717 = vmatpush1.msra.mxu0 %v2144_v38  ;;  %1370 = vmatpush3.msra.mxu1 %v2182_v48 }
 0x1b2   : > { %718 = vmatprep.subr.mxu0 %v2148_v39  ;;  %1371 = vmatprep.subr.mxu1 %v2557_v58 }
 0x1b3   : > { %719 = vmatpush1.msra.mxu0 %v2154_v41  ;;  %1372 = vmatpush3.msra.mxu1 %v2188_v49 }
 0x1b4   : > { %720 = vmatprep.subr.mxu0 %v2158_v42  ;;  %1373 = vmatprep.subr.mxu1 %v2557_v58  ;;  %v1182_v42 = vld [vmem:[%s2009_s8 + $0x28] sm:$0xff] }
 0x1b5   : > { %721 = vmatpush1.msra.mxu0 %v2164_v44  ;;  %754 = vmatprep.mubr.f32.mxu0 %v2557_v58 }
 0x1b6   : > { %1374 = vmatpush3.msra.mxu1 %v2194_v50  ;;  %1375 = vmatprep.mubr.msk.f32.mxu1 %vm1802_vm0, %v2557_v58 }
 0x1b7   : > { %859 = vmatprep.subr.mxu0 %v2029_v1  ;;  %1378 = vmatprep.subr.mxu1 %v2557_v58 }
 0x256   : > { %v587_v63 = vpop.f32.mrf.mxu0  ;;  %v658_v51 = vpop.f32.mrf.mxu1 }
 0x257   : > { %v662_v52 = vadd.f32 %v1180_v45, %v587_v63  ;;  %v676_v50 = vadd.f32 %v2270_v0, %v658_v51 }
 0x258   : > { %v1342_v53 = vpop.f32.mrf.mxu1  ;;  %v589_v56 = vpop.f32.mrf.mxu0 }
 0x259   : > { %v1183_v54 = vmul.f32 -1.442695, %v662_v52  ;;  %v669_v57 = vadd.f32 %v1181_v55, %v589_v56 }
 0x25b   : > { %1553 = vpow2.f32 %v1183_v54  ;;  %v1184_v59 = vmul.f32 -1.442695, %v669_v57 }
 0x25d   : > { %1555 = vpow2.f32 %v1184_v59 }
 0x268   : > { %v1554_v60 = vpop.eup %1553 }
 0x269   : > { %v666_v61 = vadd.f32 1.0, %v1554_v60 }
 0x26a   : > { %v1556_v1 = vpop.eup %1555 }
 0x26b   : > { %1557 = vrcp.f32 %v666_v61  ;;  %v673_v62 = vadd.f32 1.0, %v1556_v1 }
 0x26d   : > { %1559 = vrcp.f32 %v673_v62 }
 0x278   : > { %v1558_v44 = vpop.eup %1557 }
 0x279   : > { %v677_v45 = vmul.f32 %v1558_v44, %v676_v50 }
 0x27a   : > { %v1560_v52 = vpop.eup %1559 }
 0x27b   : > { %v678_v63 = vadd.f32 %v1182_v42, %v677_v45  ;;  %v680_v53 = vsub.f32 1.0, %v1560_v52  ;;  %v682_v56 = vmul.f32 %v1560_v52, %v2275_v5  ;;  %v1186_v5 = vld [vmem:[%s2009_s8 + $0x30] sm:$0xff] }
 0x27d   : > { %1561 = vtanh.f32 %v678_v63 }
 0x28a   : > { %v1562_v54 = vpop.eup %1561 }
 0x28b   : > { %v681_v55 = vmul.f32 %v1562_v54, %v680_v53 }
 0x28d   : > { %v2353_v57 = vadd.f32 %v682_v56, %v681_v55 }
 0x28f   : > { %1185 = vst [vmem:[%s2026_s3 + $0x8] sm:$0xff] %v2353_v57  ;;  %755 = vmatmul.mubr.f32.vlgmr.msra.gmra.mxu0 %v2353_v57  ;;  %1376 = vmatmul.mubr.f32.vlgmr.msra.gmra.mxu1 %v2353_v57 }
 0x290   : > { %860 = vmatpush1.msra.mxu0 %v2031_v2  ;;  %1379 = vmatpush3.msra.mxu1 %v2069_v15  ;;  %v2558_v2 = vld [vmem:[#allocation22_spill] sm:$0xff] }
 0x291   : > { %861 = vmatprep.subr.mxu0 %v2033_v3  ;;  %1380 = vmatprep.subr.mxu1 %v2557_v58  ;;  %v2559_v3 = vld [vmem:[#allocation23_spill] sm:$0xff] }
 0x292   : > { %862 = vmatpush1.msra.mxu0 %v2036_v4  ;;  %1381 = vmatpush3.msra.mxu1 %v2075_v17  ;;  %v2560_v4 = vld [vmem:[#allocation24_spill] sm:$0xff] }
 0x293   : > { %863 = vmatprep.subr.mxu0 %v2040_v6  ;;  %1382 = vmatprep.subr.mxu1 %v2557_v58 }
 0x294   : > { %864 = vmatpush1.msra.mxu0 %v2044_v7  ;;  %1383 = vmatpush3.msra.mxu1 %v2081_v19 }
 0x295   : > { %865 = vmatprep.subr.mxu0 %v2049_v8  ;;  %1384 = vmatprep.subr.mxu1 %v2557_v58 }
 0x296   : > { %866 = vmatpush1.msra.mxu0 %v2052_v9  ;;  %1385 = vmatpush3.msra.mxu1 %v2091_v22 }
 0x297   : > { %867 = vmatprep.subr.mxu0 %v2055_v10  ;;  %1386 = vmatprep.subr.mxu1 %v2557_v58 }
 0x298   : > { %868 = vmatpush1.msra.mxu0 %v2058_v11  ;;  %1387 = vmatpush3.msra.mxu1 %v2101_v25  ;;  %v1187_v11 = vld [vmem:[%s2009_s8 + $0x38] sm:$0xff] }
 0x299   : > { %869 = vmatprep.subr.mxu0 %v2061_v12  ;;  %1388 = vmatprep.subr.mxu1 %v2557_v58 }
 0x29a   : > { %870 = vmatpush1.msra.mxu0 %v2064_v13  ;;  %1389 = vmatpush3.msra.mxu1 %v2111_v28 }
 0x29b   : > { %871 = vmatprep.subr.mxu0 %v2067_v14  ;;  %1390 = vmatprep.subr.mxu1 %v2557_v58 }
 0x29c   : > { %872 = vmatpush1.msra.mxu0 %v2072_v16  ;;  %1391 = vmatpush3.msra.mxu1 %v2121_v31 }
 0x29d   : > { %873 = vmatprep.subr.mxu0 %v2078_v18  ;;  %1392 = vmatprep.subr.mxu1 %v2557_v58 }
 0x29e   : > { %874 = vmatpush1.msra.mxu0 %v2084_v20  ;;  %1393 = vmatpush3.msra.mxu1 %v2131_v34 }
 0x29f   : > { %875 = vmatprep.subr.mxu0 %v2088_v21  ;;  %1394 = vmatprep.subr.mxu1 %v2557_v58  ;;  %v1188_v21 = vld [vmem:[%s2009_s8 + $0x40] sm:$0xff] }
 0x2a0   : > { %876 = vmatpush1.msra.mxu0 %v2094_v23  ;;  %1395 = vmatpush3.msra.mxu1 %v2141_v37 }
 0x2a1   : > { %877 = vmatprep.subr.mxu0 %v2098_v24  ;;  %1396 = vmatprep.subr.mxu1 %v2557_v58 }
 0x2a2   : > { %878 = vmatpush1.msra.mxu0 %v2104_v26  ;;  %1397 = vmatpush3.msra.mxu1 %v2151_v40 }
 0x2a3   : > { %879 = vmatprep.subr.mxu0 %v2108_v27  ;;  %1398 = vmatprep.subr.mxu1 %v2557_v58 }
 0x2a4   : > { %880 = vmatpush1.msra.mxu0 %v2114_v29  ;;  %1399 = vmatpush3.msra.mxu1 %v2161_v43 }
 0x2a5   : > { %881 = vmatprep.subr.mxu0 %v2118_v30  ;;  %1400 = vmatprep.subr.mxu1 %v2557_v58  ;;  %v1192_v30 = vld [vmem:[%s2009_s8 + $0x48] sm:$0xff] }
 0x2a6   : > { %882 = vmatpush1.msra.mxu0 %v2124_v32  ;;  %1401 = vmatpush3.msra.mxu1 %v2171_v46 }
 0x2a7   : > { %883 = vmatprep.subr.mxu0 %v2128_v33  ;;  %1402 = vmatprep.subr.mxu1 %v2557_v58 }
 0x2a8   : > { %884 = vmatpush1.msra.mxu0 %v2134_v35  ;;  %1403 = vmatpush3.msra.mxu1 %v2177_v47  ;;  %v1194_v47 = vld [vmem:[%s2009_s8 + $0x58] sm:$0xff] }
 0x2a9   : > { %885 = vmatprep.subr.mxu0 %v2138_v36  ;;  %1404 = vmatprep.subr.mxu1 %v2557_v58  ;;  %v1193_v36 = vld [vmem:[%s2009_s8 + $0x50] sm:$0xff]  ;;  %s2440_s8 = scalar_lea.hbm %s2564_s13, %s1201_s22 }
 0x2aa   : > { %886 = vmatpush1.msra.mxu0 %v2144_v38  ;;  %1405 = vmatpush3.msra.mxu1 %v2182_v48 }
 0x2ab   : > { %887 = vmatprep.subr.mxu0 %v2148_v39  ;;  %1406 = vmatprep.subr.mxu1 %v2557_v58 }
 0x2ac   : > { %888 = vmatpush1.msra.mxu0 %v2154_v41  ;;  %1407 = vmatpush3.msra.mxu1 %v2188_v49 }
 0x2ad   : > { %889 = vmatprep.subr.mxu0 %v2558_v2  ;;  %1408 = vmatprep.subr.mxu1 %v2557_v58 }
 0x2ae   : > { %890 = vmatpush1.msra.mxu0 %v2559_v3  ;;  %923 = vmatprep.mubr.f32.mxu0 %v2557_v58 }
 0x2af   : > { %1409 = vmatpush3.msra.mxu1 %v2560_v4  ;;  %1410 = vmatprep.mubr.msk.f32.mxu1 %vm1802_vm0, %v2557_v58 }
 0x34f   : > { %v756_v6 = vpop.f32.mrf.mxu0  ;;  %v827_v7 = vpop.f32.mrf.mxu1 }
 0x350   : > { %v831_v8 = vadd.f32 %v1186_v5, %v756_v6  ;;  %v845_v19 = vadd.f32 %v2270_v0, %v827_v7 }
 0x351   : > { %v1377_v9 = vpop.f32.mrf.mxu1  ;;  %v758_v12 = vpop.f32.mrf.mxu0 }
 0x352   : > { %v1189_v10 = vmul.f32 -1.442695, %v831_v8  ;;  %v838_v13 = vadd.f32 %v1187_v11, %v758_v12 }
 0x354   : > { %1563 = vpow2.f32 %v1189_v10  ;;  %v1190_v14 = vmul.f32 -1.442695, %v838_v13 }
 0x356   : > { %1565 = vpow2.f32 %v1190_v14 }
 0x361   : > { %v1564_v15 = vpop.eup %1563 }
 0x362   : > { %v835_v16 = vadd.f32 1.0, %v1564_v15 }
 0x363   : > { %v1566_v17 = vpop.eup %1565 }
 0x364   : > { %1567 = vrcp.f32 %v835_v16  ;;  %v842_v18 = vadd.f32 1.0, %v1566_v17 }
 0x366   : > { %1569 = vrcp.f32 %v842_v18 }
 0x371   : > { %v1568_v20 = vpop.eup %1567 }
 0x372   : > { %v846_v22 = vmul.f32 %v1568_v20, %v845_v19 }
 0x373   : > { %v1570_v24 = vpop.eup %1569 }
 0x374   : > { %v847_v23 = vadd.f32 %v1188_v21, %v846_v22  ;;  %v849_v25 = vsub.f32 1.0, %v1570_v24  ;;  %v851_v28 = vmul.f32 %v1570_v24, %v2353_v57 }
 0x376   : > { %1571 = vtanh.f32 %v847_v23 }
 0x383   : > { %v1572_v26 = vpop.eup %1571 }
 0x384   : > { %v850_v27 = vmul.f32 %v1572_v26, %v849_v25 }
 0x386   : > { %v852_v29 = vadd.f32 %v851_v28, %v850_v27 }
 0x388   : > { %1191 = vst [vmem:[%s2026_s3 + $0x10] sm:$0xff] %v852_v29  ;;  %924 = vmatmul.mubr.f32.vlgmr.msra.gmra.mxu0 %v852_v29  ;;  %1411 = vmatmul.mubr.f32.vlgmr.msra.gmra.mxu1 %v852_v29 }
 0x448   : > { %v925_v31 = vpop.f32.mrf.mxu0  ;;  %v996_v32 = vpop.f32.mrf.mxu1 }
 0x449   : > { %v1000_v33 = vadd.f32 %v1192_v30, %v925_v31  ;;  %v1014_v44 = vadd.f32 %v2270_v0, %v996_v32 }
 0x44a   : > { %v1412_v34 = vpop.f32.mrf.mxu1  ;;  %v927_v37 = vpop.f32.mrf.mxu0 }
 0x44b   : > { %v1195_v35 = vmul.f32 -1.442695, %v1000_v33  ;;  %v1007_v38 = vadd.f32 %v1193_v36, %v927_v37 }
 0x44d   : > { %1573 = vpow2.f32 %v1195_v35  ;;  %v1196_v39 = vmul.f32 -1.442695, %v1007_v38 }
 0x44f   : > { %1575 = vpow2.f32 %v1196_v39 }
 0x45a   : > { %v1574_v40 = vpop.eup %1573 }
 0x45b   : > { %v1004_v41 = vadd.f32 1.0, %v1574_v40 }
 0x45c   : > { %v1576_v42 = vpop.eup %1575 }
 0x45d   : > { %1577 = vrcp.f32 %v1004_v41  ;;  %v1011_v43 = vadd.f32 1.0, %v1576_v42 }
 0x45f   : > { %1579 = vrcp.f32 %v1011_v43 }
 0x46a   : > { %v1578_v46 = vpop.eup %1577 }
 0x46b   : > { %v1015_v48 = vmul.f32 %v1578_v46, %v1014_v44 }
 0x46c   : > { %v1580_v50 = vpop.eup %1579 }
 0x46d   : > { %v1016_v49 = vadd.f32 %v1194_v47, %v1015_v48  ;;  %v1018_v58 = vsub.f32 1.0, %v1580_v50  ;;  %v1020_v60 = vmul.f32 %v1580_v50, %v852_v29 }
 0x46f   : > { %1581 = vtanh.f32 %v1016_v49 }
 0x47c   : > { %v1582_v51 = vpop.eup %1581 }
 0x47d   : > { %v1019_v59 = vmul.f32 %v1582_v51, %v1018_v58 }
 0x47f   : > { %v1021_v0 = vadd.f32 %v1020_v60, %v1019_v59 }
 0x481   : > { %1197 = vst [vmem:[%s2026_s3 + $0x18] sm:$0xff] %v1021_v0  ;;  %1024 = vst [vmem:[#allocation2] sm:$0xff] %v1021_v0 }
 0x482   : > { %1678 = shalt.err (!%p1675_p13)
}
 0x483   : > { %s1679_s3 = scalar_lea.hbm %s2440_s8, 512  ;;  %s1683_s10 = scalar_lea.hbm %s2564_s13, 2048 }
 0x484   : > { %p1680_p5 = scmp.ne.s32.totalorder %s2440_s8, %s1679_s3  ;;  %p1684_p1 = scmp.lt.s32.totalorder %s2440_s8, %s2564_s13 }
 0x485   : > { %p1685_p8 = scmp.lt.s32.totalorder %s1683_s10, %s1679_s3 }
 0x486   : > { %p1681_p6 = pnand %p1680_p5, %p1934_p12 }
 0x487   : > { %p1686_p4 = por %p1685_p8, %p1684_p1 }
 0x488   : > { %p1682_p2 = pneg %p1681_p6 }
 0x48a   : > { %p1687_p9 = pnand %p1686_p4, %p1682_p2 }
 0x48c   : > { %1690 = shalt.err (!%p1687_p9)
}
 0x48d   : > { %s1804_s11 = smov 128   ;;  %s1805_s14 = smov 256  }
 0x48e   : > { %s1806_s22 = smov 8  }
 0x48f   : > { %1425 = dma.vmem_to_hbm [thread:$0]  (%p1934_p12), %s2442_s21, 512, %s2440_s8, %s1026_s5, %s1804_s11, %s1805_s14, %s1806_s22  }
 0x490 PF: > { %s2565_s23 = sld [smem:[#allocation14_spill]]  ;;  %p1445_p3 = scmp.ge.s32.totalorder %s1793_s25, 2 }
 0x491   : > { %s2566_s30 = sld [smem:[#allocation18_spill]] }
 0x496   : > { %s1056_s6 = sand.u32 1, %s2565_s23  }
 0x497   : > { %p2567_p11 = scmp.ne.s32.totalorder %s2566_s30, 0  ;;  %s1057_s7 = scalar_lea.sflag [#allocation5], %s1056_s6 }
 0x499   : > { %p1439_p7 = pnand %p1445_p3, %p2567_p11 }
 0x49b   : > { %p1440_p10 = pneg %p1439_p7 }
 0x49d   : > { %1748 = dma.done.wait (%p1440_p10), %s1057_s7, 512  }
 0x49e   : > { %1750 = vsyncadd (%p1440_p10), %s1057_s7, 4294966784  ;;  %s23_s25 = sadd.s32 1, %s1793_s25   ;;  %s2568_s21 = sld [smem:[#allocation17_spill]] }
 0x49f   : > { %p20_p0 = scmp.ge.s32.totalorder %s23_s25, 6   ;;  %s2569_s23 = sld [smem:[#allocation19_spill]] }
 0x4a0   : > { %s2570_s29 = sld [smem:[#allocation21_spill]]  ;;  %s2571_s15 = smov %s1757_s16 }
 0x4a1   : > { %s2572_s16 = smov %s1761_s17  ;;  %s2573_s17 = smov %s1974_s2 }
 0x4a2   : > { %s2574_s18 = smov %s1769_s19  ;;  %s2575_s19 = smov %s1773_s20 }
 0x4a3   : > { %s2576_s20 = smov %s1958_s12  ;;  %s2577_s22 = smov %s1789_s24 }
 0x4a4   :  { %22 = sbr.rel (!%p20_p0) target bundleno = 15 (0xf), region = 108 }
 0x4a6   : > { %s2578_s24 = smov %s2570_s29 }
 0x4a9   :  { %1062 = vsyncpa [#allocation4], 1 }
 0x4aa   :  { %1064 = vsyncpa [#allocation4 + $0x1], 1 }
 0x4ab   :  { %1065 = vsyncpa [#allocation7], 1 }
 0x4ac   :  { %1067 = vsyncpa [#allocation7 + $0x1], 1 }
 0x4ad   :  { %1068 = vsyncpa [#allocation5], 1 }
 0x4ae   :  { %1070 = vsyncpa [#allocation5 + $0x1], 1 }

</bundles_post_ra>
